<compile_context>
chip_gen: v6e
topology: v6e:2x2x1
jax: 0.10.0
libtpu: 0.0.40
codegen_flags: <defaults>
</compile_context>

<pallas_src>
import jax
import jax.numpy as jnp
from jax import lax
from jax.experimental import pallas as pl
from jax.experimental.pallas import tpu as pltpu

_SUBLANE = 8


def _log_softmax(x):
    m = jnp.max(x, axis=-1, keepdims=True)
    z = x - m
    lse = jnp.log(jnp.sum(jnp.exp(z), axis=-1, keepdims=True))
    return z - lse


def _masked_log_softmax(x_ref, in_range):
    # Zero padded rows *before* log_softmax so garbage in the OOB part of the
    # last block cannot produce inf/nan that survives the mask.
    x = jnp.where(in_range, x_ref[...].astype(jnp.float32), 0.0)
    return _log_softmax(x) * in_range.astype(jnp.float32)


def _ce_partial(lsm, labels_ref):
    tile_n, c = lsm.shape
    class_ids = lax.broadcasted_iota(jnp.int32, (tile_n, c), 1)
    onehot = (class_ids == labels_ref[...]).astype(jnp.float32)
    return -jnp.sum(onehot * lsm)


def _dirichlet_full_kernel(n_ref, beta_ref, logits_ref, logits_ft_ref,
                           labels_ref, alphas_ref, out_ref,
                           ce_acc, lsm_acc, lsm_ft_acc):
    i = pl.program_id(0)
    tile_n = logits_ref.shape[0]

    @pl.when(i == 0)
    def _init():
        ce_acc[0] = 0.0
        lsm_acc[...] = jnp.zeros_like(lsm_acc)
        lsm_ft_acc[...] = jnp.zeros_like(lsm_ft_acc)

    n_total = n_ref[0]
    row_ids = i * tile_n + lax.broadcasted_iota(jnp.int32, (tile_n, 1), 0)
    in_range = row_ids < n_total                                  # (tile_n, 1)

    # One pass over logits: the same lsm tile feeds both the CE term and the
    # Dirichlet batch-sum (column sum over the batch axis).
    lsm = _masked_log_softmax(logits_ref, in_range)               # (tile_n, C)
    ce_acc[0] += _ce_partial(lsm, labels_ref)
    lsm_acc[...] += jnp.sum(lsm, axis=0, keepdims=True)           # (1, C)

    lsm_ft = _masked_log_softmax(logits_ft_ref, in_range)
    lsm_ft_acc[...] += jnp.sum(lsm_ft, axis=0, keepdims=True)

    @pl.when(i == pl.num_programs(0) - 1)
    def _finalize():
        inv_n = 1.0 / n_total.astype(jnp.float32)
        ce = ce_acc[0] * inv_n
        w = alphas_ref[...].astype(jnp.float32) - 1.0             # (1, C)
        score = jnp.mean(w * (lsm_acc[...] * inv_n))
        score_ft = jnp.mean(w * (lsm_ft_acc[...] * inv_n))
        out_ref[0, 0] = ce + beta_ref[0] * (score_ft - score)


def _dirichlet_ce_kernel(n_ref, logits_ref, labels_ref, out_ref, ce_acc):
    # Fast path for logits_ft=None: loss == plain cross-entropy.
    i = pl.program_id(0)
    tile_n = logits_ref.shape[0]

    @pl.when(i == 0)
    def _init():
        ce_acc[0] = 0.0

    n_total = n_ref[0]
    row_ids = i * tile_n + lax.broadcasted_iota(jnp.int32, (tile_n, 1), 0)
    in_range = row_ids < n_total
    lsm = _masked_log_softmax(logits_ref, in_range)
    ce_acc[0] += _ce_partial(lsm, labels_ref)

    @pl.when(i == pl.num_programs(0) - 1)
    def _finalize():
        out_ref[0, 0] = ce_acc[0] / n_total.astype(jnp.float32)


def dirichlet_loss(logits, labels, alphas, beta, logits_ft=None,
                   tile_rows=512, vmem_block_bytes=2 << 20):
    """JAX wrapper mirroring DirichletLoss.forward(logits, labels, logits_ft)."""
    n, c = logits.shape
    labels2d = labels.astype(jnp.int32).reshape(n, 1)
    n_arr = jnp.array([n], dtype=jnp.int32)

    # Batch tile sized so each input block stays a few MiB: 2 inputs x 2
    # pipeline buffers stay well under the scoped VMEM limit on every
    # generation (v5e 16 MiB default scoped .. v7x 64 MiB physical).
    itemsize = jnp.dtype(logits.dtype).itemsize
    rows_fit = max(_SUBLANE, vmem_block_bytes // max(c * itemsize, 1))
    tile_n = int(min(tile_rows, rows_fit))
    tile_n = max(_SUBLANE, (tile_n // _SUBLANE) * _SUBLANE)
    if n <= tile_n:
        tile_n = n  # a full-extent block is always layout-legal
    grid = (pl.cdiv(n, tile_n),)

    compiler_params = pltpu.CompilerParams(
        dimension_semantics=("arbitrary",),   # shared accumulators -> reduction
        vmem_limit_bytes=32 << 20,
    )

    smem_spec = pl.BlockSpec(memory_space=pltpu.MemorySpace.SMEM)
    logits_spec = pl.BlockSpec((tile_n, c), lambda i: (i, 0))
    labels_spec = pl.BlockSpec((tile_n, 1), lambda i: (i, 0))
    out_spec = pl.BlockSpec(memory_space=pltpu.MemorySpace.SMEM)
    out_shape = jax.ShapeDtypeStruct((1, 1), jnp.float32)

    if logits_ft is None:
        # Specialized path: skip the second input and the Dirichlet score.
        out = pl.pallas_call(
            _dirichlet_ce_kernel,
            grid=grid,
            in_specs=[smem_spec, logits_spec, labels_spec],
            out_specs=out_spec,
            out_shape=out_shape,
            scratch_shapes=[pltpu.SMEM((1,), jnp.float32)],
            compiler_params=compiler_params,
        )(n_arr, logits, labels2d)
        return out[0, 0]

    beta_arr = jnp.asarray([beta], dtype=jnp.float32)
    alphas2d = alphas.reshape(1, c)
    alphas_spec = pl.BlockSpec((1, c), lambda i: (0, 0))
    out = pl.pallas_call(
        _dirichlet_full_kernel,
        grid=grid,
        in_specs=[smem_spec, smem_spec, logits_spec, logits_spec,
                  labels_spec, alphas_spec],
        out_specs=out_spec,
        out_shape=out_shape,
        scratch_shapes=[pltpu.SMEM((1,), jnp.float32),
                        pltpu.VMEM((1, c), jnp.float32),
                        pltpu.VMEM((1, c), jnp.float32)],
        compiler_params=compiler_params,
    )(n_arr, beta_arr, logits, logits_ft, labels2d, alphas2d)
    return out[0, 0]


if __name__ == "__main__":
    key = jax.random.PRNGKey(0)
    k1, k2, k3, k4, k5, k6 = jax.random.split(key, 6)

    def ref_log_softmax(x):
        return x - jax.scipy.special.logsumexp(x, axis=-1, keepdims=True)

    def ref_loss(lg, lb, al, b, lg_ft):
        lsm = ref_log_softmax(lg)
        ce = -jnp.mean(lsm[jnp.arange(lg.shape[0]), lb])
        if lg_ft is None:
            return ce
        def score(x):
            return jnp.mean((al - 1.0) * jnp.mean(ref_log_softmax(x), axis=0))
        return ce + b * (score(lg_ft) - score(lg))

    # ---- test 1: shapes matching the module (batch=8, n_classes=32) ----
    N, C = 8, 32
    beta = 0.5
    logits = jax.random.normal(k1, (N, C), dtype=jnp.float32)
    logits_ft = jax.random.normal(k2, (N, C), dtype=jnp.float32)
    labels = jax.random.randint(k3, (N,), 0, C, dtype=jnp.int32)
    # Deterministic stand-in for torch.load(f'{path_wt}/alphas.pt'): shape (C,)
    alphas = jnp.linspace(0.5, 2.5, C, dtype=jnp.float32)

    loss = dirichlet_loss(logits, labels, alphas, beta, logits_ft)
    jax.block_until_ready(loss)
    ref = ref_loss(logits, labels, alphas, beta, logits_ft)
    assert jnp.allclose(loss, ref, rtol=1e-5, atol=1e-5), (loss, ref)

    # logits_ft=None -> specialized CE-only kernel; loss == cross-entropy.
    loss_none = dirichlet_loss(logits, labels, alphas, beta, None)
    jax.block_until_ready(loss_none)
    ref_none = ref_loss(logits, labels, alphas, beta, None)
    assert jnp.allclose(loss_none, ref_none, rtol=1e-5, atol=1e-5), (loss_none, ref_none)

    # ---- test 2: multi-tile grid with a partial last tile (mask path) ----
    N2, C2 = 20, 16
    logits2 = jax.random.normal(k4, (N2, C2), dtype=jnp.float32)
    logits2_ft = jax.random.normal(k5, (N2, C2), dtype=jnp.float32)
    labels2 = jax.random.randint(k6, (N2,), 0, C2, dtype=jnp.int32)
    alphas2 = jnp.linspace(0.5, 1.5, C2, dtype=jnp.float32)
    loss2 = dirichlet_loss(logits2, labels2, alphas2, beta, logits2_ft, tile_rows=8)
    jax.block_until_ready(loss2)
    ref2 = ref_loss(logits2, labels2, alphas2, beta, logits2_ft)
    assert jnp.allclose(loss2, ref2, rtol=1e-5, atol=1e-5), (loss2, ref2)

    print("KERNEL_OK")
</pallas_src>

<mosaic_0001>
module attributes {stable_mosaic.version = 11 : i64} {
  func.func @_dirichlet_full_kernel(%arg0: i32, %arg1: memref<1xi32, #tpu.memory_space<smem>>, %arg2: memref<1xf32, #tpu.memory_space<smem>>, %arg3: memref<8x32xf32, #tpu.memory_space<vmem>>, %arg4: memref<8x32xf32, #tpu.memory_space<vmem>>, %arg5: memref<8x1xi32, #tpu.memory_space<vmem>>, %arg6: memref<1x32xf32, #tpu.memory_space<vmem>>, %arg7: memref<1x1xf32, #tpu.memory_space<smem>>, %arg8: memref<1xf32, #tpu.memory_space<smem>>, %arg9: memref<1x32xf32, #tpu.memory_space<vmem>>, %arg10: memref<1x32xf32, #tpu.memory_space<vmem>>) attributes {dimension_semantics = [#tpu.dimension_semantics<arbitrary>], iteration_bounds = array<i64: 1>, scalar_prefetch = 0 : i64, scratch_operands = 3 : i64, tpu.core_type = #tpu.core_type<tc>, window_params = [{transform_indices = @transform_0, window_bounds = array<i64: 1>}, {transform_indices = @transform_1, window_bounds = array<i64: 1>}, {transform_indices = @transform_2, window_bounds = array<i64: 8, 32>}, {transform_indices = @transform_3, window_bounds = array<i64: 8, 32>}, {transform_indices = @transform_4, window_bounds = array<i64: 8, 1>}, {pipeline_mode = #tpu.pipeline_mode<synchronous>, transform_indices = @transform_5, window_bounds = array<i64: 1, 32>}, {transform_indices = @transform_6, window_bounds = array<i64: 1, 1>}]} {
    %c0_i32 = arith.constant 0 : i32
    %0 = arith.cmpi eq, %arg0, %c0_i32 : i32
    %1 = arith.extui %0 : i1 to i32
    %c0_i32_0 = arith.constant 0 : i32
    %2 = arith.cmpi ne, %1, %c0_i32_0 : i32
    scf.if %2 {
      %cst_28 = arith.constant 0.000000e+00 : f32
      %c0_29 = arith.constant 0 : index
      %76 = memref.load %arg8[%c0_29] : memref<1xf32, #tpu.memory_space<smem>>
      memref.store %cst_28, %arg8[%c0_29] : memref<1xf32, #tpu.memory_space<smem>>
      %cst_30 = arith.constant 0.000000e+00 : f32
      %77 = vector.broadcast %cst_30 : f32 to vector<1x32xf32>
      %c0_31 = arith.constant 0 : index
      %c0_32 = arith.constant 0 : index
      %78 = vector.load %arg9[%c0_31, %c0_32] : memref<1x32xf32, #tpu.memory_space<vmem>>, vector<1x32xf32>
      tpu.vector_store %arg9[%c0_31, %c0_32], %77 {strides = array<i32>} : memref<1x32xf32, #tpu.memory_space<vmem>>, vector<1x32xf32>,
      %cst_33 = arith.constant 0.000000e+00 : f32
      %79 = vector.broadcast %cst_33 : f32 to vector<1x32xf32>
      %c0_34 = arith.constant 0 : index
      %c0_35 = arith.constant 0 : index
      %80 = vector.load %arg10[%c0_34, %c0_35] : memref<1x32xf32, #tpu.memory_space<vmem>>, vector<1x32xf32>
      tpu.vector_store %arg10[%c0_34, %c0_35], %79 {strides = array<i32>} : memref<1x32xf32, #tpu.memory_space<vmem>>, vector<1x32xf32>,
    } else {
    }
    %c0 = arith.constant 0 : index
    %3 = memref.load %arg1[%c0] : memref<1xi32, #tpu.memory_space<smem>>
    %c8_i32 = arith.constant 8 : i32
    %4 = arith.muli %arg0, %c8_i32 : i32
    %5 = tpu.iota {dimensions = array<i32: 0>} : vector<8x1xi32>
    %6 = vector.broadcast %4 : i32 to vector<8x1xi32>
    %7 = arith.addi %6, %5 : vector<8x1xi32>
    %8 = vector.broadcast %3 : i32 to vector<8x1xi32>
    %9 = arith.cmpi slt, %7, %8 : vector<8x1xi32>
    %c0_1 = arith.constant 0 : index
    %c0_2 = arith.constant 0 : index
    %10 = vector.load %arg3[%c0_1, %c0_2] : memref<8x32xf32, #tpu.memory_space<vmem>>, vector<8x32xf32>
    %cst = arith.constant 0.000000e+00 : f32
    %11 = vector.shape_cast %9 : vector<8x1xi1> to vector<8x1xi1>
    %12 = vector.broadcast %11 : vector<8x1xi1> to vector<8x32xi1>
    %13 = vector.broadcast %cst : f32 to vector<8x32xf32>
    %14 = arith.select %12, %10, %13 : vector<8x32xi1>, vector<8x32xf32>
    %cst_3 = arith.constant dense<0xFF800000> : vector<8xf32>
    %15 = vector.multi_reduction <maximumf>, %14, %cst_3 [1] : vector<8x32xf32> to vector<8xf32>
    %16 = vector.shape_cast %15 : vector<8xf32> to vector<8x1xf32>
    %17 = vector.broadcast %16 : vector<8x1xf32> to vector<8x32xf32>
    %18 = arith.subf %14, %17 : vector<8x32xf32>
    %19 = math.exp %18 : vector<8x32xf32>
    %cst_4 = arith.constant dense<0.000000e+00> : vector<8xf32>
    %20 = vector.multi_reduction <add>, %19, %cst_4 [1] : vector<8x32xf32> to vector<8xf32>
    %21 = vector.shape_cast %20 : vector<8xf32> to vector<8x1xf32>
    %22 = math.log %21 : vector<8x1xf32>
    %23 = vector.broadcast %22 : vector<8x1xf32> to vector<8x32xf32>
    %24 = arith.subf %18, %23 : vector<8x32xf32>
    %25 = arith.extui %9 : vector<8x1xi1> to vector<8x1xi32>
    %26 = arith.sitofp %25 : vector<8x1xi32> to vector<8x1xf32>
    %27 = vector.broadcast %26 : vector<8x1xf32> to vector<8x32xf32>
    %28 = arith.mulf %24, %27 : vector<8x32xf32>
    %c0_5 = arith.constant 0 : index
    %29 = memref.load %arg8[%c0_5] : memref<1xf32, #tpu.memory_space<smem>>
    %30 = tpu.iota {dimensions = array<i32: 1>} : vector<8x32xi32>
    %c0_6 = arith.constant 0 : index
    %c0_7 = arith.constant 0 : index
    %31 = vector.load %arg5[%c0_6, %c0_7] : memref<8x1xi32, #tpu.memory_space<vmem>>, vector<8x1xi32>
    %32 = vector.broadcast %31 : vector<8x1xi32> to vector<8x32xi32>
    %33 = arith.cmpi eq, %30, %32 : vector<8x32xi32>
    %34 = arith.extui %33 : vector<8x32xi1> to vector<8x32xi32>
    %35 = arith.sitofp %34 : vector<8x32xi32> to vector<8x32xf32>
    %36 = arith.mulf %35, %28 : vector<8x32xf32>
    %37 = vector.shape_cast %36 : vector<8x32xf32> to vector<1x8x32xf32>
    %cst_8 = arith.constant dense<0.000000e+00> : vector<1xf32>
    %38 = vector.multi_reduction <add>, %37, %cst_8 [1, 2] : vector<1x8x32xf32> to vector<1xf32>
    %39 = vector.shape_cast %38 : vector<1xf32> to vector<1x1x1xf32>
    %40 = vector.extract %39[0, 0, 0] : f32 from vector<1x1x1xf32>
    %cst_9 = arith.constant 0.000000e+00 : f32
    %41 = arith.subf %cst_9, %40 : f32
    %42 = arith.addf %29, %41 : f32
    %c0_10 = arith.constant 0 : index
    %43 = memref.load %arg8[%c0_10] : memref<1xf32, #tpu.memory_space<smem>>
    memref.store %42, %arg8[%c0_10] : memref<1xf32, #tpu.memory_space<smem>>
    %c0_11 = arith.constant 0 : index
    %c0_12 = arith.constant 0 : index
    %44 = vector.load %arg9[%c0_11, %c0_12] : memref<1x32xf32, #tpu.memory_space<vmem>>, vector<1x32xf32>
    %cst_13 = arith.constant dense<0.000000e+00> : vector<32xf32>
    %45 = vector.multi_reduction <add>, %28, %cst_13 [0] : vector<8x32xf32> to vector<32xf32>
    %46 = vector.shape_cast %45 : vector<32xf32> to vector<1x32xf32>
    %47 = arith.addf %44, %46 : vector<1x32xf32>
    %c0_14 = arith.constant 0 : index
    %c0_15 = arith.constant 0 : index
    %48 = vector.load %arg9[%c0_14, %c0_15] : memref<1x32xf32, #tpu.memory_space<vmem>>, vector<1x32xf32>
    tpu.vector_store %arg9[%c0_14, %c0_15], %47 {strides = array<i32>} : memref<1x32xf32, #tpu.memory_space<vmem>>, vector<1x32xf32>,
    %c0_16 = arith.constant 0 : index
    %c0_17 = arith.constant 0 : index
    %49 = vector.load %arg4[%c0_16, %c0_17] : memref<8x32xf32, #tpu.memory_space<vmem>>, vector<8x32xf32>
    %cst_18 = arith.constant 0.000000e+00 : f32
    %50 = vector.shape_cast %9 : vector<8x1xi1> to vector<8x1xi1>
    %51 = vector.broadcast %50 : vector<8x1xi1> to vector<8x32xi1>
    %52 = vector.broadcast %cst_18 : f32 to vector<8x32xf32>
    %53 = arith.select %51, %49, %52 : vector<8x32xi1>, vector<8x32xf32>
    %cst_19 = arith.constant dense<0xFF800000> : vector<8xf32>
    %54 = vector.multi_reduction <maximumf>, %53, %cst_19 [1] : vector<8x32xf32> to vector<8xf32>
    %55 = vector.shape_cast %54 : vector<8xf32> to vector<8x1xf32>
    %56 = vector.broadcast %55 : vector<8x1xf32> to vector<8x32xf32>
    %57 = arith.subf %53, %56 : vector<8x32xf32>
    %58 = math.exp %57 : vector<8x32xf32>
    %cst_20 = arith.constant dense<0.000000e+00> : vector<8xf32>
    %59 = vector.multi_reduction <add>, %58, %cst_20 [1] : vector<8x32xf32> to vector<8xf32>
    %60 = vector.shape_cast %59 : vector<8xf32> to vector<8x1xf32>
    %61 = math.log %60 : vector<8x1xf32>
    %62 = vector.broadcast %61 : vector<8x1xf32> to vector<8x32xf32>
    %63 = arith.subf %57, %62 : vector<8x32xf32>
    %64 = arith.extui %9 : vector<8x1xi1> to vector<8x1xi32>
    %65 = arith.sitofp %64 : vector<8x1xi32> to vector<8x1xf32>
    %66 = vector.broadcast %65 : vector<8x1xf32> to vector<8x32xf32>
    %67 = arith.mulf %63, %66 : vector<8x32xf32>
    %c0_21 = arith.constant 0 : index
    %c0_22 = arith.constant 0 : index
    %68 = vector.load %arg10[%c0_21, %c0_22] : memref<1x32xf32, #tpu.memory_space<vmem>>, vector<1x32xf32>
    %cst_23 = arith.constant dense<0.000000e+00> : vector<32xf32>
    %69 = vector.multi_reduction <add>, %67, %cst_23 [0] : vector<8x32xf32> to vector<32xf32>
    %70 = vector.shape_cast %69 : vector<32xf32> to vector<1x32xf32>
    %71 = arith.addf %68, %70 : vector<1x32xf32>
    %c0_24 = arith.constant 0 : index
    %c0_25 = arith.constant 0 : index
    %72 = vector.load %arg10[%c0_24, %c0_25] : memref<1x32xf32, #tpu.memory_space<vmem>>, vector<1x32xf32>
    tpu.vector_store %arg10[%c0_24, %c0_25], %71 {strides = array<i32>} : memref<1x32xf32, #tpu.memory_space<vmem>>, vector<1x32xf32>,
    %c0_i32_26 = arith.constant 0 : i32
    %73 = arith.cmpi eq, %arg0, %c0_i32_26 : i32
    %74 = arith.extui %73 : i1 to i32
    %c0_i32_27 = arith.constant 0 : i32
    %75 = arith.cmpi ne, %74, %c0_i32_27 : i32
    scf.if %75 {
      %76 = arith.sitofp %3 : i32 to f32
      %cst_28 = arith.constant 1.000000e+00 : f32
      %77 = arith.divf %cst_28, %76 : f32
      %c0_29 = arith.constant 0 : index
      %78 = memref.load %arg8[%c0_29] : memref<1xf32, #tpu.memory_space<smem>>
      %79 = arith.mulf %78, %77 : f32
      %c0_30 = arith.constant 0 : index
      %c0_31 = arith.constant 0 : index
      %80 = vector.load %arg6[%c0_30, %c0_31] : memref<1x32xf32, #tpu.memory_space<vmem>>, vector<1x32xf32>
      %cst_32 = arith.constant 1.000000e+00 : f32
      %81 = vector.broadcast %cst_32 : f32 to vector<1x32xf32>
      %82 = arith.subf %80, %81 : vector<1x32xf32>
      %c0_33 = arith.constant 0 : index
      %c0_34 = arith.constant 0 : index
      %83 = vector.load %arg9[%c0_33, %c0_34] : memref<1x32xf32, #tpu.memory_space<vmem>>, vector<1x32xf32>
      %84 = vector.broadcast %77 : f32 to vector<1x32xf32>
      %85 = arith.mulf %83, %84 : vector<1x32xf32>
      %86 = arith.mulf %82, %85 : vector<1x32xf32>
      %87 = vector.shape_cast %86 : vector<1x32xf32> to vector<1x1x32xf32>
      %cst_35 = arith.constant dense<0.000000e+00> : vector<1xf32>
      %88 = vector.multi_reduction <add>, %87, %cst_35 [1, 2] : vector<1x1x32xf32> to vector<1xf32>
      %89 = vector.shape_cast %88 : vector<1xf32> to vector<1x1x1xf32>
      %90 = vector.extract %89[0, 0, 0] : f32 from vector<1x1x1xf32>
      %cst_36 = arith.constant 3.200000e+01 : f32
      %91 = arith.divf %90, %cst_36 : f32
      %c0_37 = arith.constant 0 : index
      %c0_38 = arith.constant 0 : index
      %92 = vector.load %arg10[%c0_37, %c0_38] : memref<1x32xf32, #tpu.memory_space<vmem>>, vector<1x32xf32>
      %93 = vector.broadcast %77 : f32 to vector<1x32xf32>
      %94 = arith.mulf %92, %93 : vector<1x32xf32>
      %95 = arith.mulf %82, %94 : vector<1x32xf32>
      %96 = vector.shape_cast %95 : vector<1x32xf32> to vector<1x1x32xf32>
      %cst_39 = arith.constant dense<0.000000e+00> : vector<1xf32>
      %97 = vector.multi_reduction <add>, %96, %cst_39 [1, 2] : vector<1x1x32xf32> to vector<1xf32>
      %98 = vector.shape_cast %97 : vector<1xf32> to vector<1x1x1xf32>
      %99 = vector.extract %98[0, 0, 0] : f32 from vector<1x1x1xf32>
      %cst_40 = arith.constant 3.200000e+01 : f32
      %100 = arith.divf %99, %cst_40 : f32
      %c0_41 = arith.constant 0 : index
      %101 = memref.load %arg2[%c0_41] : memref<1xf32, #tpu.memory_space<smem>>
      %102 = arith.subf %100, %91 : f32
      %103 = arith.mulf %101, %102 : f32
      %104 = arith.addf %79, %103 : f32
      %c0_42 = arith.constant 0 : index
      %c0_43 = arith.constant 0 : index
      %105 = memref.load %arg7[%c0_42, %c0_43] : memref<1x1xf32, #tpu.memory_space<smem>>
      memref.store %104, %arg7[%c0_42, %c0_43] : memref<1x1xf32, #tpu.memory_space<smem>>
    } else {
    }
    return
  }
  func.func @transform_0(%arg0: i32) -> i32 {
    %c0_i32 = arith.constant 0 : i32
    %c0_i32_0 = arith.constant 0 : i32
    return %c0_i32 : i32
  }
  func.func @transform_1(%arg0: i32) -> i32 {
    %c0_i32 = arith.constant 0 : i32
    %c0_i32_0 = arith.constant 0 : i32
    return %c0_i32 : i32
  }
  func.func @transform_2(%arg0: i32) -> (i32, i32) {
    %c0_i32 = arith.constant 0 : i32
    %c0_i32_0 = arith.constant 0 : i32
    return %arg0, %c0_i32 : i32, i32
  }
  func.func @transform_3(%arg0: i32) -> (i32, i32) {
    %c0_i32 = arith.constant 0 : i32
    %c0_i32_0 = arith.constant 0 : i32
    return %arg0, %c0_i32 : i32, i32
  }
  func.func @transform_4(%arg0: i32) -> (i32, i32) {
    %c0_i32 = arith.constant 0 : i32
    %c0_i32_0 = arith.constant 0 : i32
    return %arg0, %c0_i32 : i32, i32
  }
  func.func @transform_5(%arg0: i32) -> (i32, i32) {
    %c0_i32 = arith.constant 0 : i32
    %c0_i32_0 = arith.constant 0 : i32
    %c0_i32_1 = arith.constant 0 : i32
    return %c0_i32, %c0_i32_0 : i32, i32
  }
  func.func @transform_6(%arg0: i32) -> (i32, i32) {
    %c0_i32 = arith.constant 0 : i32
    %c0_i32_0 = arith.constant 0 : i32
    %c0_i32_1 = arith.constant 0 : i32
    return %c0_i32, %c0_i32_0 : i32, i32
  }
}

</mosaic_0001>

<bundles_post_ra>
// kernel: tpu_custom_call.1
= control target key start
LH: loop header
LB: loop body
LE: loop exit
PB: predicated region body
PF: predicated region fallthrough
CT: control target
= control target key end

     0   :  { %13 = vsyncpa [#allocation8], 0  ;;  %s351_s0 = inlined_call_operand.<no memory space> [shape: s32[1], index: 0, kind: input, shape index: {}]   ;;  %s352_s1 = inlined_call_operand.<no memory space> [shape: f32[1], index: 1, kind: input, shape index: {}]   ;;  %s353_s2 = inlined_call_operand.vmem [shape: f32[8,32], index: 2, kind: input, shape index: {}]   ;;  %s354_s3 = inlined_call_operand.hbm [shape: f32[8,32], index: 3, kind: input, shape index: {}]   ;;  %s355_s4 = inlined_call_operand.vmem [shape: s32[8,1], index: 4, kind: input, shape index: {}]   ;;  %s356_s5 = inlined_call_operand.vmem [shape: f32[1,32], index: 5, kind: input, shape index: {}]   ;;  %s357_s6 = inlined_call_operand.hbm [shape: f32[1,1], index: 6, kind: output, shape index: {}]  }
   0x1   :  { %14 = vsyncpa [#allocation9], 0  ;;  %s258_s21 = smov [#allocation7]  }
   0x2   :  { %s27_s22 = sshll.u32 %s258_s21, 4  ;;  %s28_s22 = int_to_ptr.vmem [resolvable:$true] %s27_s22 }
   0x3   :  { %s234_s23 = scalar_lea.vmem %s28_s22, 128  ;;  %p239_p1 = scmp.lt.s32.totalorder %s28_s22, %s28_s22 }
   0x4   :  { %p235_p0 = scmp.ne.s32.totalorder %s28_s22, %s234_s23  ;;  %p240_p2 = scmp.lt.s32.totalorder %s234_s23, %s234_s23 }
   0x6   :  { %p241_p3 = por %p240_p2, %p239_p1 }
   0x8   :  { %p242_p4 = pnand %p241_p3, %p235_p0 }
   0xa   :  { %245 = shalt.err (!%p242_p4)
}
   0xb   :  { %30 = dma.hbm_to_vmem [thread:$0]  %s354_s3, 128, %s28_s22, [#allocation8]  }
   0xc   :  { %254 = dma.done.wait [#allocation8], 128  }
   0xd   :  { %255 = vsyncadd [#allocation8], 4294967168  ;;  %v49_v0 = vlaneseq  ;;  %v53_v2 = vstv %s351_s0  ;;  %vm59_vm1 = vcmask 261120   ;;  %v55_v4 = vld [vmem:[%s353_s2] sm:$0xff]  ;;  %v259_v9 = vmov 0   ;;  %s138_s7 = scvt.s32.f32 %s351_s0  ;;  %s261_s21 = smov [#allocation10]  }
   0xe   :  { %v110_v7 = vld [vmem:[#allocation7] sm:$0xff]  ;;  %214 = vset.pattern.permute.xlu1 %v259_v9  ;;  %215 = vset.pattern.permute.xlu0 %v259_v9  ;;  %vm44_vm2 = vcmask 253952   ;;  %v260_v17 = vmov 0.0  }
   0xf   :  { %v50_v1 = vshrl.u32 %v49_v0, 7  ;;  %v77_v11 = vld [vmem:[%s355_s4] sm:$0xff]  ;;  %45 = vst.msk [vmem:[#allocation3] sm:$0x1] %vm44_vm2, %v260_v17  ;;  %46 = vst.msk [vmem:[#allocation4] sm:$0x1] %vm44_vm2, %v260_v17  ;;  %v139_v43 = vstv %s138_s7 }
  0x10   :  { %v76_v22 = vand.u32 127, %v49_v0 }
  0x11   :  { %vm303_vm0 = vcmp.lt.s32.totalorder %v50_v1, %v53_v2  ;;  %v144_v2 = vld [vmem:[%s356_s5] sm:$0x1] }
  0x12   :  { %v58_v5 = vsel %vm303_vm0, %v55_v4, 0.0  ;;  %v111_v8 = vsel %vm303_vm0, %v110_v7, 0.0  ;;  %v199_v26 = vsel %vm303_vm0, 1.0, %v260_v17  ;;  %v201_v3 = vadd.f32 -1.0, %v144_v2 }
  0x13   :  { %v60_v6 = vsel %vm59_vm1, %v58_v5, -inf  ;;  %v112_v10 = vsel %vm59_vm1, %v111_v8, -inf }
  0x14   :  { %61 = vmax.xlane.f32.xlu0 %v60_v6  ;;  %113 = vmax.xlane.f32.xlu1 %v112_v10 }
  0x16   :  { %v99_v40 = vld [vmem:[#allocation3] sm:$0x1]  ;;  %v125_v63 = vld [vmem:[#allocation4] sm:$0x1] }
  0x25   :  { %79 = vperm.xlu1 %214, %v77_v11  }
  0x9d   :  { %v62_v12 = vpop.xlane.xlu0 %61  ;;  %v114_v18 = vpop.xlane.xlu1 %113 }
  0x9e   :  { %v63_v13 = vsub.f32 %v58_v5, %v62_v12  ;;  %v115_v20 = vsub.f32 %v111_v8, %v114_v18 }
  0xa0   :  { %v64_v14 = vmul.f32 1.442695, %v63_v13  ;;  %v116_v21 = vmul.f32 1.442695, %v115_v20 }
  0xa1   :  { %v80_v23 = vpop.permute.xlu1 %79 }
  0xa2   :  { %216 = vpow2.f32 %v64_v14  ;;  %vm81_vm3 = vcmp.eq.s32.totalorder %v76_v22, %v80_v23 }
  0xa3   :  { %v200_v28 = vsel %vm81_vm3, 1.0, %v260_v17 }
  0xaf   :  { %v217_v15 = vpop.eup %216 }
  0xb0   :  { %v66_v16 = vsel %vm59_vm1, %v217_v15, 0.0 }
  0xb1   :  { %67 = vadd.xlane.f32.xlu0 %v66_v16 }
 0x13a   :  { %v68_v19 = vpop.xlane.xlu0 %67 }
 0x13b   :  { %218 = vlog2.f32 %v68_v19 }
 0x13c   :  { %220 = vpow2.f32 %v116_v21 }
 0x13d   :  { %222 = vrcp.f32 %v139_v43 }
 0x148   :  { %v219_v24 = vpop.eup %218 }
 0x149   :  { %v70_v25 = vmul.f32 0.6931472, %v219_v24  ;;  %v221_v32 = vpop.eup %220 }
 0x14a   :  { %v118_v36 = vsel %vm59_vm1, %v221_v32, 0.0  ;;  %v223_v51 = vpop.eup %222 }
 0x14b   :  { %v71_v27 = vsub.f32 %v63_v13, %v70_v25 }
 0x14d   :  { %v73_v29 = vmul.f32 %v199_v26, %v71_v27 }
 0x14f   :  { %v84_v30 = vmul.f32 %v200_v28, %v73_v29  ;;  %v100_v31 = vsel %vm59_vm1, %v73_v29, 0.0 }
 0x150   :  { %v101_v33 = vrot.slane %v100_v31, 4 }
 0x151   :  { %v85_v34 = vsel %vm59_vm1, %v84_v30, 0.0 }
 0x152   :  { %v102_v35 = vadd.f32 %v101_v33, %v100_v31  ;;  %86 = vadd.xlane.f32.xlu0 %v85_v34 }
 0x154   :  { %v103_v37 = vrot.slane %v102_v35, 2 }
 0x156   :  { %v104_v38 = vadd.f32 %v103_v37, %v102_v35  ;;  %119 = vadd.xlane.f32.xlu0 %v118_v36 }
 0x158   :  { %v105_v39 = vrot.slane %v104_v38, 1 }
 0x15a   :  { %v106_v41 = vadd.f32 %v105_v39, %v104_v38 }
 0x15c   :  { %v107_v42 = vadd.f32 %v106_v41, %v99_v40 }
 0x15e   :  { %109 = vst.msk [vmem:[#allocation3] sm:$0x1] %vm44_vm2, %v107_v42 }
 0x165   :  { %v146_v4 = vld [vmem:[#allocation3] sm:$0x1] }
 0x1db   :  { %v87_v44 = vpop.xlane.xlu0 %86 }
 0x1dc   :  { %v88_v45 = vrot.slane %v87_v44, 4 }
 0x1de   :  { %v89_v46 = vadd.f32 %v88_v45, %v87_v44 }
 0x1df   :  { %v120_v47 = vpop.xlane.xlu0 %119 }
 0x1e0   :  { %v90_v48 = vrot.slane %v89_v46, 2  ;;  %224 = vlog2.f32 %v120_v47 }
 0x1e2   :  { %v91_v49 = vadd.f32 %v90_v48, %v89_v46 }
 0x1e4   :  { %v92_v50 = vrot.slane %v91_v49, 1 }
 0x1e6   :  { %v93_v52 = vadd.f32 %v92_v50, %v91_v49 }
 0x1e8   :  { %202 = vpush %v93_v52 }
 0x1e9   :  { %204 = vpush %v223_v51 }
 0x1ed   :  { %v225_v53 = vpop.eup %224 }
 0x1ee   :  { %v122_v54 = vmul.f32 0.6931472, %v225_v53 }
 0x1f0   :  { %v123_v55 = vsub.f32 %v115_v20, %v122_v54 }
 0x1f2   :  { %v124_v56 = vmul.f32 %v199_v26, %v123_v55 }
 0x1f4   :  { %v126_v57 = vsel %vm59_vm1, %v124_v56, 0.0 }
 0x1f5   :  { %v127_v58 = vrot.slane %v126_v57, 4 }
 0x1f7   :  { %v128_v59 = vadd.f32 %v127_v58, %v126_v57 }
 0x1f9   :  { %v129_v60 = vrot.slane %v128_v59, 2 }
 0x1fb   :  { %v130_v61 = vadd.f32 %v129_v60, %v128_v59 }
 0x1fd   :  { %v131_v62 = vrot.slane %v130_v61, 1 }
 0x1ff   :  { %v132_v0 = vadd.f32 %v131_v62, %v130_v61 }
 0x201   :  { %v133_v1 = vadd.f32 %v132_v0, %v125_v63 }
 0x203   :  { %134 = vst.msk [vmem:[#allocation4] sm:$0x1] %vm44_vm2, %v133_v1 }
 0x20a   :  { %v163_v6 = vld [vmem:[#allocation4] sm:$0x1] }
 0x219   :  { %s336_s9 = spop %202 }
 0x21a   :  { %s338_s10 = spop %204  ;;  %s95_s11 = ssub.f32 0.0, %s336_s9 }
 0x21b   :  { %v147_v5 = vstv %s338_s10 }
 0x21c   :  { %v148_v7 = vmul.f32 %v147_v5, %v146_v4  ;;  %v164_v8 = vmul.f32 %v163_v6, %v147_v5  ;;  %s143_s16 = smul.f32 %s338_s10, %s95_s11 }
 0x21e   :  { %v149_v9 = vmul.f32 %v201_v3, %v148_v7  ;;  %v165_v11 = vmul.f32 %v201_v3, %v164_v8 }
 0x220   :  { %v150_v10 = vsel %vm44_vm2, %v149_v9, 0.0  ;;  %v166_v12 = vsel %vm44_vm2, %v165_v11, 0.0 }
 0x221   :  { %151 = vadd.xlane.f32.xlu0 %v150_v10 }
 0x225   :  { %167 = vadd.xlane.f32.xlu0 %v166_v12 }
 0x2aa   :  { %v152_v13 = vpop.xlane.xlu0 %151 }
 0x2ab   :  { %v153_v14 = vrot.slane %v152_v13, 4 }
 0x2ad   :  { %v154_v15 = vadd.f32 %v153_v14, %v152_v13 }
 0x2ae   :  { %v168_v16 = vpop.xlane.xlu0 %167 }
 0x2af   :  { %v155_v17 = vrot.slane %v154_v15, 2  ;;  %v169_v18 = vrot.slane %v168_v16, 4 }
 0x2b1   :  { %v170_v19 = vadd.f32 %v169_v18, %v168_v16  ;;  %v156_v20 = vadd.f32 %v155_v17, %v154_v15 }
 0x2b3   :  { %v171_v21 = vrot.slane %v170_v19, 2  ;;  %v157_v22 = vrot.slane %v156_v20, 1 }
 0x2b5   :  { %v172_v23 = vadd.f32 %v171_v21, %v170_v19  ;;  %v158_v24 = vadd.f32 %v157_v22, %v156_v20 }
 0x2b7   :  { %206 = vpush %v158_v24  ;;  %v173_v25 = vrot.slane %v172_v23, 1 }
 0x2b9   :  { %v174_v26 = vadd.f32 %v173_v25, %v172_v23 }
 0x2bb   :  { %208 = vpush %v174_v26 }
 0x2e8   :  { %s207_s5 = spop %206 }
 0x2e9   :  { %s162_s12 = smul.f32 0.03125, %s207_s5 }
 0x2ec   :  { %s209_s13 = spop %208 }
 0x2ed   :  { %s178_s14 = smul.f32 0.03125, %s209_s13 }
 0x2ef   :  { %s180_s15 = ssub.f32 %s178_s14, %s162_s12 }
 0x2f1   :  { %s181_s19 = smul.f32 %s180_s15, %s352_s1 }
 0x2f3   :  { %s182_s20 = sadd.f32 %s181_s19, %s143_s16 }
 0x2f5   :  { %184 = sst [smem:[#allocation10]] %s182_s20 }
 0x2f6   :  { %192 = dma.smem_to_hbm %s261_s21, 16, %s357_s6, [#allocation9]  }
 0x2f7   :  { %256 = dma.done.wait [#allocation9], 16  }
 0x2f8   :  { %257 = vsyncadd [#allocation9], 4294967280 }
 0x2f9   :  { %196 = sfence }
 0x2fa   :  { %197 = vsyncpa [#allocation8], 1 }
 0x2fb   :  { %198 = vsyncpa [#allocation9], 1 }

</bundles_post_ra>
